<compile_context>
chip_gen: v7x
topology: tpu7x:2x2x1
jax: 0.10.0
libtpu: 0.0.40
codegen_flags: <defaults>
</compile_context>

<pallas_src>
import jax
import jax.numpy as jnp
from jax.experimental import pallas as pl
from jax.experimental.pallas import tpu as pltpu


# MaxPool2d hyper-parameters fixed by the module.
_KERNEL, _STRIDE, _PAD, _DIL = 2, 2, 1, 2


def _out_hw(h, w):
    ho = (h + 2 * _PAD - _DIL * (_KERNEL - 1) - 1) // _STRIDE + 1
    wo = (w + 2 * _PAD - _DIL * (_KERNEL - 1) - 1) // _STRIDE + 1
    return ho, wo


def _pool_add_kernel(e_ref, other_ref, out_ref):
    """e_ref:     (BC, Ho+1, Wo+1)  even-parity plane of the (-inf)-padded input
       other_ref: (BC, Ho,   Wo)
       out_ref:   (BC, Ho,   Wo)
    The dilated max-pool reduces to a separable 2x2 stride-1 max over e."""
    ho = out_ref.shape[-2]
    wo = out_ref.shape[-1]
    e = e_ref[...]
    # Separable max: sublane (row) shift first, then a single lane-offset operand.
    m = jnp.maximum(e[:, :ho, :], e[:, 1:, :])         # (BC, Ho, Wo+1)
    v1 = jnp.maximum(m[:, :, :wo], m[:, :, 1:])        # (BC, Ho, Wo)
    out_ref[...] = v1 + other_ref[...]


def _block_channels(nc, ho, wo, itemsize):
    """Channels per grid step.  (e + other + out) block, double-buffered by the
    Pallas pipeline, must stay well under the smallest default scoped-VMEM limit
    (16 MiB on v5e; 32 MiB scoped / 64 MiB physical on v7x)."""
    per_chan = ((ho + 1) * (wo + 1) + 2 * ho * wo) * itemsize * 2  # x2: double buffer
    budget = 4 * 1024 * 1024
    return int(max(1, min(nc, budget // max(per_chan, 1))))


@jax.jit
def model_forward(x, other):
    """x: (N, C, H, W) float32; other: (N, C, Ho, Wo) float32 -> (N, C, Ho, Wo)."""
    n, c, h, w = x.shape
    ho, wo = _out_hw(h, w)
    nc = n * c

    # Layout-only prologue (fused by XLA inside this single jit / device program):
    # e[b, i, j] = xpad[b, 2i, 2j]  -> shape (NC, Ho+1, Wo+1), -inf is the max identity.
    xp = jnp.pad(x, ((0, 0), (0, 0), (1, 1), (1, 1)), constant_values=-jnp.inf)
    e = xp[:, :, ::2, ::2].reshape(nc, ho + 1, wo + 1)
    other2 = other.reshape(nc, ho, wo)

    bc = _block_channels(nc, ho, wo, x.dtype.itemsize)
    grid = (pl.cdiv(nc, bc),)

    out2 = pl.pallas_call(
        _pool_add_kernel,
        out_shape=jax.ShapeDtypeStruct((nc, ho, wo), x.dtype),
        grid=grid,
        in_specs=[
            pl.BlockSpec((bc, ho + 1, wo + 1), lambda i: (i, 0, 0)),
            pl.BlockSpec((bc, ho, wo), lambda i: (i, 0, 0)),
        ],
        out_specs=pl.BlockSpec((bc, ho, wo), lambda i: (i, 0, 0)),
        compiler_params=pltpu.CompilerParams(
            # Channel-block axis is embarrassingly parallel -> can be sharded
            # across both TensorCores on v7x; harmless on v5e/v6e (1 TC).
            dimension_semantics=("parallel",),
        ),
    )(e, other2)

    return out2.reshape(n, c, ho, wo)


def reference_forward(x, other):
    """Pure-JAX reference of MaxPool2d(2, stride=2, padding=1, dilation=2) + add."""
    pooled = jax.lax.reduce_window(
        x, -jnp.inf, jax.lax.max,
        window_dimensions=(1, 1, _KERNEL, _KERNEL),
        window_strides=(1, 1, _STRIDE, _STRIDE),
        padding=((0, 0), (0, 0), (_PAD, _PAD), (_PAD, _PAD)),
        window_dilation=(1, 1, _DIL, _DIL),
    )
    return pooled + other


if __name__ == "__main__":
    # Small shapes consistent with the module (original input was (15, 19, 19, 31) NCHW).
    N, C, H, W = 2, 4, 19, 31
    Ho, Wo = _out_hw(H, W)                        # -> (10, 16)

    key = jax.random.PRNGKey(0)
    kx, ko = jax.random.split(key)
    x = jax.random.normal(kx, (N, C, H, W), dtype=jnp.float32)
    # forward(other=None) draws other = randn(v1.shape); generated deterministically here.
    other = jax.random.normal(ko, (N, C, Ho, Wo), dtype=jnp.float32)

    out = jax.block_until_ready(model_forward(x, other))
    ref = reference_forward(x, other)

    assert out.shape == (N, C, Ho, Wo)
    assert jnp.allclose(out, ref, atol=1e-6, rtol=1e-6), "mismatch vs reference"
    print("KERNEL_OK")
</pallas_src>

<mosaic_0001>
module attributes {stable_mosaic.version = 11 : i64} {
  func.func @_pool_add_kernel(%arg0: i32, %arg1: memref<8x11x17xf32, #tpu.memory_space<vmem>>, %arg2: memref<8x10x16xf32, #tpu.memory_space<vmem>>, %arg3: memref<8x10x16xf32, #tpu.memory_space<vmem>>) attributes {dimension_semantics = [#tpu.dimension_semantics<parallel>], iteration_bounds = array<i64: 1>, scalar_prefetch = 0 : i64, scratch_operands = 0 : i64, tpu.core_type = #tpu.core_type<tc>, window_params = [{transform_indices = @transform_0, window_bounds = array<i64: 8, 11, 17>}, {transform_indices = @transform_1, window_bounds = array<i64: 8, 10, 16>}, {transform_indices = @transform_2, window_bounds = array<i64: 8, 10, 16>}]} {
    %c0 = arith.constant 0 : index
    %c0_0 = arith.constant 0 : index
    %c0_1 = arith.constant 0 : index
    %0 = vector.load %arg1[%c0, %c0_0, %c0_1] : memref<8x11x17xf32, #tpu.memory_space<vmem>>, vector<8x11x17xf32>
    %1 = vector.extract_strided_slice %0 {offsets = [0, 0, 0], sizes = [8, 10, 17], strides = [1, 1, 1]} : vector<8x11x17xf32> to vector<8x10x17xf32>
    %2 = vector.extract_strided_slice %0 {offsets = [0, 1, 0], sizes = [8, 10, 17], strides = [1, 1, 1]} : vector<8x11x17xf32> to vector<8x10x17xf32>
    %3 = arith.maximumf %1, %2 : vector<8x10x17xf32>
    %4 = vector.extract_strided_slice %3 {offsets = [0, 0, 0], sizes = [8, 10, 16], strides = [1, 1, 1]} : vector<8x10x17xf32> to vector<8x10x16xf32>
    %5 = vector.extract_strided_slice %3 {offsets = [0, 0, 1], sizes = [8, 10, 16], strides = [1, 1, 1]} : vector<8x10x17xf32> to vector<8x10x16xf32>
    %6 = arith.maximumf %4, %5 : vector<8x10x16xf32>
    %c0_2 = arith.constant 0 : index
    %c0_3 = arith.constant 0 : index
    %c0_4 = arith.constant 0 : index
    %7 = vector.load %arg2[%c0_2, %c0_3, %c0_4] : memref<8x10x16xf32, #tpu.memory_space<vmem>>, vector<8x10x16xf32>
    %8 = arith.addf %6, %7 : vector<8x10x16xf32>
    %c0_5 = arith.constant 0 : index
    %c0_6 = arith.constant 0 : index
    %c0_7 = arith.constant 0 : index
    %9 = vector.load %arg3[%c0_5, %c0_6, %c0_7] : memref<8x10x16xf32, #tpu.memory_space<vmem>>, vector<8x10x16xf32>
    tpu.vector_store %arg3[%c0_5, %c0_6, %c0_7], %8 {strides = array<i32>} : memref<8x10x16xf32, #tpu.memory_space<vmem>>, vector<8x10x16xf32>,
    return
  }
  func.func @transform_0(%arg0: i32) -> (i32, i32, i32) {
    %c0_i32 = arith.constant 0 : i32
    %c0_i32_0 = arith.constant 0 : i32
    %c0_i32_1 = arith.constant 0 : i32
    return %arg0, %c0_i32, %c0_i32_0 : i32, i32, i32
  }
  func.func @transform_1(%arg0: i32) -> (i32, i32, i32) {
    %c0_i32 = arith.constant 0 : i32
    %c0_i32_0 = arith.constant 0 : i32
    %c0_i32_1 = arith.constant 0 : i32
    return %arg0, %c0_i32, %c0_i32_0 : i32, i32, i32
  }
  func.func @transform_2(%arg0: i32) -> (i32, i32, i32) {
    %c0_i32 = arith.constant 0 : i32
    %c0_i32_0 = arith.constant 0 : i32
    %c0_i32_1 = arith.constant 0 : i32
    return %arg0, %c0_i32, %c0_i32_0 : i32, i32, i32
  }
}

</mosaic_0001>

<bundles_post_ra>
// kernel: model_forward.1
= control target key start
LH: loop header
LB: loop body
LE: loop exit
PB: predicated region body
PF: predicated region fallthrough
CT: control target
= control target key end

     0   :  { %vm43_vm0 = vcmask 1046528   ;;  %s235_s25 = smov 127   ;;  %vm214_vm1 = vcmask 123904   ;;  %vm212_vm2 = vcmask 130048   ;;  %s499_s0 = inlined_call_operand.vmem [shape: f32[8,11,17], index: 0, kind: input, shape index: {}]   ;;  %s500_s1 = inlined_call_operand.vmem [shape: f32[8,10,16], index: 1, kind: input, shape index: {}]   ;;  %s501_s2 = inlined_call_operand.vmem [shape: f32[8,10,16], index: 2, kind: output, shape index: {}]  }
   0x1   :  { %v14_v0 = vld [vmem:[%s499_s0 + $0x18] sm:$0x7]  ;;  %v12_v1 = vld [vmem:[%s499_s0 + $0x8] sm:$0x7]  ;;  %v13_v2 = vld [vmem:[%s499_s0 + $0x10] sm:$0xff] }
   0x2   :  { %v48_v3 = vrot.slane %v14_v0, 1  ;;  %v45_v4 = vrot.slane %v12_v1, 1  ;;  %v47_v5 = vrot.slane %v13_v2, 1  ;;  %v11_v6 = vld [vmem:[%s499_s0] sm:$0xff]  ;;  %v16_v7 = vld [vmem:[%s499_s0 + $0x28] sm:$0x7] }
   0x3   :  { %v44_v8 = vrot.slane %v11_v6, 1  ;;  %v51_v9 = vrot.slane %v16_v7, 1  ;;  %v15_v10 = vld [vmem:[%s499_s0 + $0x20] sm:$0xff]  ;;  %v18_v15 = vld [vmem:[%s499_s0 + $0x38] sm:$0x7]  ;;  %v17_v16 = vld [vmem:[%s499_s0 + $0x30] sm:$0xff] }
   0x4   :  { %v269_v11 = vmax.f32 %v14_v0, %v48_v3  ;;  %v271_v12 = vmax.f32 %v12_v1, %v45_v4  ;;  %v49_v13 = vsel %vm43_vm0, %v47_v5, %v48_v3  ;;  %v50_v14 = vrot.slane %v15_v10, 1  ;;  %v20_v23 = vld [vmem:[%s499_s0 + $0x48] sm:$0x7]  ;;  %v19_v24 = vld [vmem:[%s499_s0 + $0x40] sm:$0xff]  ;;  %v22_v30 = vld [vmem:[%s499_s0 + $0x58] sm:$0x7] }
   0x5   :  { %v46_v17 = vsel %vm43_vm0, %v44_v8, %v45_v4  ;;  %v285_v18 = vmax.f32 %v13_v2, %v49_v13  ;;  %v54_v21 = vrot.slane %v18_v15, 1  ;;  %v53_v22 = vrot.slane %v17_v16, 1  ;;  %v21_v31 = vld [vmem:[%s499_s0 + $0x50] sm:$0xff]  ;;  %v24_v37 = vld [vmem:[%s499_s0 + $0x68] sm:$0x7]  ;;  %v23_v38 = vld [vmem:[%s499_s0 + $0x60] sm:$0xff] }
   0x6   :  { %122 = vrot.lane.b32.xlu1 %v269_v11, %s235_s25  ;;  %118 = vrot.lane.b32.xlu0 %v271_v12, %s235_s25  ;;  %v287_v19 = vmax.f32 %v11_v6, %v46_v17  ;;  %v52_v20 = vsel %vm43_vm0, %v50_v14, %v51_v9  ;;  %v300_v25 = vmax.f32 %v16_v7, %v51_v9  ;;  %v57_v28 = vrot.slane %v20_v23, 1  ;;  %v26_v44 = vld [vmem:[%s499_s0 + $0x78] sm:$0x7]  ;;  %v25_v45 = vld [vmem:[%s499_s0 + $0x70] sm:$0xff] }
   0x7   :  { %v302_v26 = vmax.f32 %v15_v10, %v52_v20  ;;  %v55_v27 = vsel %vm43_vm0, %v53_v22, %v54_v21  ;;  %v56_v29 = vrot.slane %v19_v24, 1  ;;  %v315_v32 = vmax.f32 %v18_v15, %v54_v21  ;;  %v183_v56 = vld [vmem:[%s500_s1 + $0x18] sm:$0x3]  ;;  %v181_v58 = vld [vmem:[%s500_s1 + $0x8] sm:$0x3]  ;;  %v182_v0 = vld [vmem:[%s500_s1 + $0x10] sm:$0xff] }
   0x8   :  { %v317_v33 = vmax.f32 %v17_v16, %v55_v27  ;;  %v60_v35 = vrot.slane %v22_v30, 1  ;;  %v59_v36 = vrot.slane %v21_v31, 1  ;;  %v330_v39 = vmax.f32 %v20_v23, %v57_v28  ;;  %v180_v2 = vld [vmem:[%s500_s1] sm:$0xff]  ;;  %v185_v8 = vld [vmem:[%s500_s1 + $0x28] sm:$0x3] }
   0x9   :  { %v58_v34 = vsel %vm43_vm0, %v56_v29, %v57_v28  ;;  %v63_v42 = vrot.slane %v24_v37, 1  ;;  %v62_v43 = vrot.slane %v23_v38, 1  ;;  %v66_v49 = vrot.slane %v26_v44, 1  ;;  %v184_v10 = vld [vmem:[%s500_s1 + $0x20] sm:$0xff]  ;;  %v187_v16 = vld [vmem:[%s500_s1 + $0x38] sm:$0x3] }
   0xa   :  { %120 = vrot.lane.b32.xlu1 %v285_v18, %s235_s25  ;;  %116 = vrot.lane.b32.xlu0 %v287_v19, %s235_s25  ;;  %v332_v40 = vmax.f32 %v19_v24, %v58_v34  ;;  %v61_v41 = vsel %vm43_vm0, %v59_v36, %v60_v35  ;;  %v345_v46 = vmax.f32 %v22_v30, %v60_v35  ;;  %v65_v50 = vrot.slane %v25_v45, 1  ;;  %v189_v24 = vld [vmem:[%s500_s1 + $0x48] sm:$0x3]  ;;  %v190_v34 = vld [vmem:[%s500_s1 + $0x50] sm:$0xff] }
   0xb   :  { %v347_v47 = vmax.f32 %v21_v31, %v61_v41  ;;  %v64_v48 = vsel %vm43_vm0, %v62_v43, %v63_v42  ;;  %v354_v51 = vmax.f32 %v24_v37, %v63_v42  ;;  %v363_v54 = vmax.f32 %v26_v44, %v66_v49  ;;  %v192_v42 = vld [vmem:[%s500_s1 + $0x60] sm:$0xff] }
   0xc   :  { %v356_v52 = vmax.f32 %v23_v38, %v64_v48  ;;  %v67_v53 = vsel %vm43_vm0, %v65_v50, %v66_v49  ;;  %v195_v48 = vld [vmem:[%s500_s1 + $0x78] sm:$0x3]  ;;  %v194_v50 = vld [vmem:[%s500_s1 + $0x70] sm:$0xff] }
   0xd   :  { %v365_v55 = vmax.f32 %v25_v45, %v67_v53 }
   0xe   :  { %126 = vrot.lane.b32.xlu1 %v300_v25, %s235_s25  ;;  %124 = vrot.lane.b32.xlu0 %v302_v26, %s235_s25 }
  0x12   :  { %130 = vrot.lane.b32.xlu1 %v315_v32, %s235_s25  ;;  %128 = vrot.lane.b32.xlu0 %v317_v33, %s235_s25 }
  0x16   :  { %134 = vrot.lane.b32.xlu1 %v330_v39, %s235_s25  ;;  %132 = vrot.lane.b32.xlu0 %v332_v40, %s235_s25 }
  0x1a   :  { %138 = vrot.lane.b32.xlu1 %v345_v46, %s235_s25  ;;  %136 = vrot.lane.b32.xlu0 %v347_v47, %s235_s25 }
  0x1e   :  { %142 = vrot.lane.b32.xlu1 %v354_v51, %s235_s25  ;;  %140 = vrot.lane.b32.xlu0 %v356_v52, %s235_s25 }
  0x22   :  { %146 = vrot.lane.b32.xlu1 %v363_v54, %s235_s25  ;;  %144 = vrot.lane.b32.xlu0 %v365_v55, %s235_s25 }
  0x78   :  { %v123_v57 = vpop.permute.xlu1 %122  ;;  %v119_v59 = vpop.permute.xlu0 %118 }
  0x79   :  { %v167_v60 = vmax.f32 %v269_v11, %v123_v57  ;;  %v165_v61 = vmax.f32 %v271_v12, %v119_v59 }
  0x7b   :  { %v199_v62 = vadd.f32 %v183_v56, %v167_v60  ;;  %v197_v63 = vadd.f32 %v181_v58, %v165_v61 }
  0x7c   :  { %v121_v1 = vpop.permute.xlu1 %120  ;;  %v117_v3 = vpop.permute.xlu0 %116 }
  0x7d   :  { %217 = vst.msk [vmem:[%s501_s2 + $0x18] sm:$0x3] %vm214_vm1, %v199_v62  ;;  %215 = vst.msk [vmem:[%s501_s2 + $0x8] sm:$0x3] %vm214_vm1, %v197_v63  ;;  %v166_v4 = vmax.f32 %v285_v18, %v121_v1  ;;  %v164_v5 = vmax.f32 %v287_v19, %v117_v3  ;;  %v186_v18 = vld [vmem:[%s500_s1 + $0x30] sm:$0xff] }
  0x7f   :  { %v198_v6 = vadd.f32 %v182_v0, %v166_v4  ;;  %v196_v7 = vadd.f32 %v180_v2, %v164_v5 }
  0x80   :  { %v127_v9 = vpop.permute.xlu1 %126  ;;  %v125_v11 = vpop.permute.xlu0 %124 }
  0x81   :  { %216 = vst.msk [vmem:[%s501_s2 + $0x10] sm:$0xff] %vm212_vm2, %v198_v6  ;;  %213 = vst.msk [vmem:[%s501_s2] sm:$0xff] %vm212_vm2, %v196_v7  ;;  %v169_v12 = vmax.f32 %v300_v25, %v127_v9  ;;  %v168_v13 = vmax.f32 %v302_v26, %v125_v11  ;;  %v188_v26 = vld [vmem:[%s500_s1 + $0x40] sm:$0xff] }
  0x83   :  { %v201_v14 = vadd.f32 %v185_v8, %v169_v12  ;;  %v200_v15 = vadd.f32 %v184_v10, %v168_v13 }
  0x84   :  { %v131_v17 = vpop.permute.xlu1 %130  ;;  %v129_v19 = vpop.permute.xlu0 %128 }
  0x85   :  { %219 = vst.msk [vmem:[%s501_s2 + $0x28] sm:$0x3] %vm214_vm1, %v201_v14  ;;  %v171_v20 = vmax.f32 %v315_v32, %v131_v17  ;;  %v170_v21 = vmax.f32 %v317_v33, %v129_v19  ;;  %v191_v32 = vld [vmem:[%s500_s1 + $0x58] sm:$0x3] }
  0x86   :  { %218 = vst.msk [vmem:[%s501_s2 + $0x20] sm:$0xff] %vm212_vm2, %v200_v15 }
  0x87   :  { %v203_v22 = vadd.f32 %v187_v16, %v171_v20  ;;  %v202_v23 = vadd.f32 %v186_v18, %v170_v21 }
  0x88   :  { %v135_v25 = vpop.permute.xlu1 %134  ;;  %v133_v27 = vpop.permute.xlu0 %132 }
  0x89   :  { %221 = vst.msk [vmem:[%s501_s2 + $0x38] sm:$0x3] %vm214_vm1, %v203_v22  ;;  %v173_v28 = vmax.f32 %v330_v39, %v135_v25  ;;  %v172_v29 = vmax.f32 %v332_v40, %v133_v27  ;;  %v193_v40 = vld [vmem:[%s500_s1 + $0x68] sm:$0x3] }
  0x8a   :  { %220 = vst.msk [vmem:[%s501_s2 + $0x30] sm:$0xff] %vm212_vm2, %v202_v23 }
  0x8b   :  { %v205_v30 = vadd.f32 %v189_v24, %v173_v28  ;;  %v204_v31 = vadd.f32 %v188_v26, %v172_v29 }
  0x8c   :  { %v139_v33 = vpop.permute.xlu1 %138  ;;  %v137_v35 = vpop.permute.xlu0 %136 }
  0x8d   :  { %223 = vst.msk [vmem:[%s501_s2 + $0x48] sm:$0x3] %vm214_vm1, %v205_v30  ;;  %v175_v36 = vmax.f32 %v345_v46, %v139_v33  ;;  %v174_v37 = vmax.f32 %v347_v47, %v137_v35 }
  0x8e   :  { %222 = vst.msk [vmem:[%s501_s2 + $0x40] sm:$0xff] %vm212_vm2, %v204_v31 }
  0x8f   :  { %v207_v38 = vadd.f32 %v191_v32, %v175_v36  ;;  %v206_v39 = vadd.f32 %v190_v34, %v174_v37 }
  0x90   :  { %v143_v41 = vpop.permute.xlu1 %142  ;;  %v141_v43 = vpop.permute.xlu0 %140 }
  0x91   :  { %225 = vst.msk [vmem:[%s501_s2 + $0x58] sm:$0x3] %vm214_vm1, %v207_v38  ;;  %v177_v44 = vmax.f32 %v354_v51, %v143_v41  ;;  %v176_v45 = vmax.f32 %v356_v52, %v141_v43 }
  0x92   :  { %224 = vst.msk [vmem:[%s501_s2 + $0x50] sm:$0xff] %vm212_vm2, %v206_v39 }
  0x93   :  { %v209_v46 = vadd.f32 %v193_v40, %v177_v44  ;;  %v208_v47 = vadd.f32 %v192_v42, %v176_v45 }
  0x94   :  { %v147_v49 = vpop.permute.xlu1 %146  ;;  %v145_v53 = vpop.permute.xlu0 %144 }
  0x95   :  { %227 = vst.msk [vmem:[%s501_s2 + $0x68] sm:$0x3] %vm214_vm1, %v209_v46  ;;  %v179_v51 = vmax.f32 %v363_v54, %v147_v49  ;;  %v178_v52 = vmax.f32 %v365_v55, %v145_v53 }
  0x96   :  { %226 = vst.msk [vmem:[%s501_s2 + $0x60] sm:$0xff] %vm212_vm2, %v208_v47 }
  0x97   :  { %v211_v56 = vadd.f32 %v195_v48, %v179_v51  ;;  %v210_v57 = vadd.f32 %v194_v50, %v178_v52 }
  0x99   :  { %229 = vst.msk [vmem:[%s501_s2 + $0x78] sm:$0x3] %vm214_vm1, %v211_v56 }
  0x9a   :  { %228 = vst.msk [vmem:[%s501_s2 + $0x70] sm:$0xff] %vm212_vm2, %v210_v57 }

</bundles_post_ra>
